<compile_context>
chip_gen: v5e
topology: v5e:2x2
jax: 0.10.0
libtpu: 0.0.40
codegen_flags: <defaults>
</compile_context>

<pallas_src>
import jax
import jax.numpy as jnp
from jax import lax
from jax.experimental import pallas as pl
from jax.experimental.pallas import tpu as pltpu

BN_EPS = 1e-5


def _round_up(x, m):
    return (x + m - 1) // m * m


def _pick_tile_k(k_pad, cap=2048):
    """Largest multiple-of-128 divisor of k_pad that is <= cap."""
    n = k_pad // 128
    best = 1
    for d in range(1, n + 1):
        if n % d == 0 and d * 128 <= cap:
            best = d
    return best * 128


# -----------------------------------------------------------------------------
# Pallas kernel: tiled (x @ w) + bias (+ residual) (+ ReLU)
# -----------------------------------------------------------------------------
def _make_fused_kernel(apply_relu, add_residual, single_k_step):
    def kernel(*refs):
        x_ref, w_ref, bias_ref = refs[0], refs[1], refs[2]
        pos = 3
        res_ref = None
        if add_residual:
            res_ref = refs[pos]
            pos += 1
        o_ref = refs[pos]
        acc_ref = None if single_k_step else refs[pos + 1]

        # bf16 x bf16 -> f32 on the MXU.
        prod = jnp.dot(x_ref[...], w_ref[...],
                       preferred_element_type=jnp.float32)

        def epilogue(acc):
            out = acc + bias_ref[...]                    # f32 epilogue
            if add_residual:
                out = out + res_ref[...].astype(jnp.float32)
            if apply_relu:
                out = jnp.maximum(out, 0.0)
            return out.astype(o_ref.dtype)

        if single_k_step:
            # No reduction loop: write straight to the output tile.
            o_ref[...] = epilogue(prod)
        else:
            k = pl.program_id(2)

            @pl.when(k == 0)
            def _first():
                acc_ref[...] = prod          # no explicit zero-init store

            @pl.when(k > 0)
            def _accumulate():
                acc_ref[...] += prod

            @pl.when(k == pl.num_programs(2) - 1)
            def _finalize():
                o_ref[...] = epilogue(acc_ref[...])

    return kernel


def fused_matmul_bn(x, w_scaled, bias, residual=None, *, apply_relu,
                    out_dtype=jnp.float32):
    """out = maybe_relu(x @ w_scaled + bias [+ residual]).

    x:         (M, K)  activations (cast to bf16 for the MXU)
    w_scaled:  (K, C)  weights with BN scale folded in
    bias:      (C,)    folded BN bias (kept f32 for the epilogue)
    residual:  (M, C)  or None (carried in bf16, added in f32)
    """
    M, K = x.shape
    Kw, C = w_scaled.shape
    assert K == Kw

    # Lane dims (K, C) padded to multiples of 128; sublane dim (M) to 16
    # (bf16 packing).  tk is a divisor of the padded K so no zero reduction
    # tiles are ever streamed.
    K_pad = _round_up(K, 128)
    C_pad = _round_up(C, 128)

    tm = min(512, _round_up(M, 16))
    tn = min(256, C_pad)
    tk = _pick_tile_k(K_pad, cap=2048)

    M_pad = _round_up(M, tm)

    x_p = jnp.pad(x.astype(jnp.bfloat16), ((0, M_pad - M), (0, K_pad - K)))
    w_p = jnp.pad(w_scaled.astype(jnp.bfloat16),
                  ((0, K_pad - K), (0, C_pad - C)))
    b_p = jnp.pad(bias.astype(jnp.float32).reshape(1, C),
                  ((0, 0), (0, C_pad - C)))

    # Grid order (j, i, k): with a single K step the weight panel and the
    # bias block stay resident across all M tiles of an output column.
    grid = (C_pad // tn, M_pad // tm, K_pad // tk)
    single_k_step = grid[2] == 1

    in_specs = [
        pl.BlockSpec((tm, tk), lambda j, i, k: (i, k)),   # activations
        pl.BlockSpec((tk, tn), lambda j, i, k: (k, j)),   # weights
        pl.BlockSpec((1, tn), lambda j, i, k: (0, j)),    # bias (resident)
    ]
    args = [x_p, w_p, b_p]

    add_residual = residual is not None
    if add_residual:
        r_p = jnp.pad(residual.astype(jnp.bfloat16),
                      ((0, M_pad - M), (0, C_pad - C)))
        in_specs.append(pl.BlockSpec((tm, tn), lambda j, i, k: (i, j)))
        args.append(r_p)

    scratch = [] if single_k_step else [pltpu.VMEM((tm, tn), jnp.float32)]

    out = pl.pallas_call(
        _make_fused_kernel(apply_relu, add_residual, single_k_step),
        out_shape=jax.ShapeDtypeStruct((M_pad, C_pad), out_dtype),
        grid_spec=pltpu.PrefetchScalarGridSpec(
            num_scalar_prefetch=0,
            grid=grid,
            in_specs=in_specs,
            out_specs=pl.BlockSpec((tm, tn), lambda j, i, k: (i, j)),
            scratch_shapes=scratch,
        ),
        compiler_params=pltpu.CompilerParams(
            dimension_semantics=("parallel", "parallel", "arbitrary"),
            vmem_limit_bytes=48 * 1024 * 1024,
        ),
    )(*args)
    return out[:M, :C]


# -----------------------------------------------------------------------------
# Glue: im2col, weight reshaping, BN folding (plain JAX)
# -----------------------------------------------------------------------------
def im2col(x_nhwc, ksize, stride, pad):
    """Returns (N*Ho*Wo, ksize*ksize*C) patches and output spatial dims."""
    N, H, W, C = x_nhwc.shape
    xp = jnp.pad(x_nhwc, ((0, 0), (pad, pad), (pad, pad), (0, 0)))
    Ho = (H + 2 * pad - ksize) // stride + 1
    Wo = (W + 2 * pad - ksize) // stride + 1
    pieces = []
    for dy in range(ksize):
        for dx in range(ksize):
            pieces.append(xp[:, dy:dy + stride * Ho:stride,
                             dx:dx + stride * Wo:stride, :])
    cols = jnp.concatenate(pieces, axis=-1)          # (N, Ho, Wo, k*k*C)
    return cols.reshape(N * Ho * Wo, ksize * ksize * C), (N, Ho, Wo)


def conv_weight_to_matrix(w_oihw):
    """(Cout, Cin, kh, kw) -> (kh*kw*Cin, Cout), matching im2col ordering."""
    cout, cin, kh, kw = w_oihw.shape
    return jnp.transpose(w_oihw, (2, 3, 1, 0)).reshape(kh * kw * cin, cout)


def fold_bn_into_weights(w_mat, gamma, beta, mean, var):
    """Fold BN scale into the (K, C) weight matrix; return (w', bias)."""
    scale = gamma / jnp.sqrt(var + BN_EPS)           # (C,)
    bias = beta - mean * scale                       # (C,)
    return w_mat * scale[None, :], bias


def resblock_forward(x_nchw, params):
    """Pallas-backed forward pass. Input/output are NCHW float32."""
    downsample = params["downsample"]
    stride = 2 if downsample else 1
    cout = params["w1"].shape[0]

    # bf16 activations *before* im2col: halves the HBM bytes of the 9x-sized
    # im2col intermediate and avoids a separate astype pass.
    x = jnp.transpose(x_nchw, (0, 2, 3, 1)).astype(jnp.bfloat16)   # NHWC bf16

    # --- conv1 + bn1 + relu (no residual; bf16 intermediate) ---
    cols1, (N, Ho, Wo) = im2col(x, 3, stride, 1)
    w1m, b1 = fold_bn_into_weights(conv_weight_to_matrix(params["w1"]),
                                   *params["bn1"])
    out1 = fused_matmul_bn(cols1, w1m, b1, residual=None,
                           apply_relu=True, out_dtype=jnp.bfloat16)
    out1_nhwc = out1.reshape(N, Ho, Wo, cout)

    # --- residual branch (bf16; added in f32 inside the conv2 epilogue) ---
    if downsample:
        cols_ds, (Nd, Hod, Wod) = im2col(x, 1, 2, 0)        # 1x1 stride-2 conv
        assert (Nd, Hod, Wod) == (N, Ho, Wo)
        wdm, bds = fold_bn_into_weights(conv_weight_to_matrix(params["wds"]),
                                        *params["bnds"])
        residual = fused_matmul_bn(cols_ds, wdm, bds, residual=None,
                                   apply_relu=False, out_dtype=jnp.bfloat16)
    else:
        residual = x.reshape(N * Ho * Wo, cout)

    # --- conv2 + bn2 + residual add + relu ---
    cols2, _ = im2col(out1_nhwc, 3, 1, 1)
    w2m, b2 = fold_bn_into_weights(conv_weight_to_matrix(params["w2"]),
                                   *params["bn2"])
    out2 = fused_matmul_bn(cols2, w2m, b2, residual=residual,
                           apply_relu=True, out_dtype=jnp.float32)

    return jnp.transpose(out2.reshape(N, Ho, Wo, cout), (0, 3, 1, 2))  # NCHW


# -----------------------------------------------------------------------------
# Pure-JAX f32 reference (for verification)
# -----------------------------------------------------------------------------
def _bn_ref(y, gamma, beta, mean, var):
    g = gamma[None, :, None, None]
    b = beta[None, :, None, None]
    m = mean[None, :, None, None]
    v = var[None, :, None, None]
    return (y - m) / jnp.sqrt(v + BN_EPS) * g + b


def resblock_reference(x_nchw, params):
    dn = ("NCHW", "OIHW", "NCHW")
    downsample = params["downsample"]
    stride = 2 if downsample else 1
    out = lax.conv_general_dilated(x_nchw, params["w1"], (stride, stride),
                                   ((1, 1), (1, 1)), dimension_numbers=dn)
    out = jnp.maximum(_bn_ref(out, *params["bn1"]), 0.0)
    out = lax.conv_general_dilated(out, params["w2"], (1, 1),
                                   ((1, 1), (1, 1)), dimension_numbers=dn)
    out = _bn_ref(out, *params["bn2"])
    if downsample:
        res = lax.conv_general_dilated(x_nchw, params["wds"], (2, 2),
                                       ((0, 0), (0, 0)), dimension_numbers=dn)
        res = _bn_ref(res, *params["bnds"])
    else:
        res = x_nchw
    return jnp.maximum(out + res, 0.0)


# -----------------------------------------------------------------------------
# Deterministic parameter init (shapes from resblock.__init__)
# -----------------------------------------------------------------------------
def init_params(key, in_channels, out_channels):
    downsample = in_channels != out_channels
    ks = jax.random.split(key, 12)

    def bn_params(k0, k1, k2, k3, c):
        gamma = jax.random.uniform(k0, (c,), jnp.float32, 0.5, 1.5)
        beta = 0.1 * jax.random.normal(k1, (c,), jnp.float32)
        mean = 0.1 * jax.random.normal(k2, (c,), jnp.float32)
        var = jax.random.uniform(k3, (c,), jnp.float32, 0.5, 1.5)
        return (gamma, beta, mean, var)

    params = {
        "downsample": downsample,
        "w1": 0.1 * jax.random.normal(ks[0], (out_channels, in_channels, 3, 3),
                                      jnp.float32),
        "w2": 0.1 * jax.random.normal(ks[1], (out_channels, out_channels, 3, 3),
                                      jnp.float32),
        "bn1": bn_params(ks[2], ks[3], ks[4], ks[5], out_channels),
        "bn2": bn_params(ks[6], ks[7], ks[8], ks[9], out_channels),
    }
    if downsample:
        params["wds"] = 0.1 * jax.random.normal(
            ks[10], (out_channels, in_channels, 1, 1), jnp.float32)
        params["bnds"] = bn_params(*jax.random.split(ks[11], 4), out_channels)
    return params


# -----------------------------------------------------------------------------
if __name__ == "__main__":
    key = jax.random.PRNGKey(0)
    kx, kp1, kp2 = jax.random.split(key, 3)
    x = jax.random.normal(kx, (2, 4, 16, 16), jnp.float32)  # NCHW

    # bf16 MXU operands / bf16 residual carry (f32 accumulate + epilogue):
    # compare against the f32 reference with a bf16-appropriate tolerance.
    ATOL = 5e-2
    RTOL = 5e-2

    ok = True
    # Case 1: downsample block (in_channels != out_channels, stride 2)
    params_ds = init_params(kp1, 4, 8)
    fwd_ds = jax.jit(lambda xx: resblock_forward(xx, params_ds))
    out_ds = jax.block_until_ready(fwd_ds(x))
    ref_ds = resblock_reference(x, params_ds)
    ok &= out_ds.shape == (2, 8, 8, 8)
    ok &= bool(jnp.allclose(out_ds, ref_ds, atol=ATOL, rtol=RTOL))

    # Case 2: identity block (in_channels == out_channels, stride 1)
    params_id = init_params(kp2, 4, 4)
    fwd_id = jax.jit(lambda xx: resblock_forward(xx, params_id))
    out_id = jax.block_until_ready(fwd_id(x))
    ref_id = resblock_reference(x, params_id)
    ok &= out_id.shape == (2, 4, 16, 16)
    ok &= bool(jnp.allclose(out_id, ref_id, atol=ATOL, rtol=RTOL))

    if ok:
        print("KERNEL_OK")
    else:
        print("MISMATCH")
</pallas_src>

<mosaic_0001>
module attributes {stable_mosaic.version = 11 : i64} {
  func.func @kernel(%arg0: i32, %arg1: i32, %arg2: i32, %arg3: memref<128x128xbf16, #tpu.memory_space<vmem>>, %arg4: memref<128x128xbf16, #tpu.memory_space<vmem>>, %arg5: memref<1x128xf32, #tpu.memory_space<vmem>>, %arg6: memref<128x128xbf16, #tpu.memory_space<vmem>>) attributes {dimension_semantics = [#tpu.dimension_semantics<parallel>, #tpu.dimension_semantics<parallel>, #tpu.dimension_semantics<arbitrary>], iteration_bounds = array<i64: 1, 1, 1>, scalar_prefetch = 0 : i64, scratch_operands = 0 : i64, tpu.core_type = #tpu.core_type<tc>, window_params = [{transform_indices = @transform_0, window_bounds = array<i64: 128, 128>}, {transform_indices = @transform_1, window_bounds = array<i64: 128, 128>}, {transform_indices = @transform_2, window_bounds = array<i64: 1, 128>}, {transform_indices = @transform_3, window_bounds = array<i64: 128, 128>}]} {
    %c0 = arith.constant 0 : index
    %c0_0 = arith.constant 0 : index
    %0 = vector.load %arg3[%c0, %c0_0] : memref<128x128xbf16, #tpu.memory_space<vmem>>, vector<128x128xbf16>
    %c0_1 = arith.constant 0 : index
    %c0_2 = arith.constant 0 : index
    %1 = vector.load %arg4[%c0_1, %c0_2] : memref<128x128xbf16, #tpu.memory_space<vmem>>, vector<128x128xbf16>
    %cst = arith.constant dense<0.000000e+00> : vector<128x128xf32>
    %2 = tpu.matmul %0, %1, %cst {dimension_numbers = #tpu.dot_dimension_numbers<[1], [0], [0], [1], [0, 0, 1, 1], [], []>} : vector<128x128xbf16>, vector<128x128xbf16>, vector<128x128xf32> -> vector<128x128xf32>
    %c0_3 = arith.constant 0 : index
    %c0_4 = arith.constant 0 : index
    %3 = vector.load %arg5[%c0_3, %c0_4] : memref<1x128xf32, #tpu.memory_space<vmem>>, vector<1x128xf32>
    %4 = vector.broadcast %3 : vector<1x128xf32> to vector<128x128xf32>
    %5 = arith.addf %2, %4 : vector<128x128xf32>
    %cst_5 = arith.constant 0.000000e+00 : f32
    %6 = vector.broadcast %cst_5 : f32 to vector<128x128xf32>
    %7 = arith.maximumf %5, %6 : vector<128x128xf32>
    %8 = arith.truncf %7 : vector<128x128xf32> to vector<128x128xbf16>
    %c0_6 = arith.constant 0 : index
    %c0_7 = arith.constant 0 : index
    %9 = vector.load %arg6[%c0_6, %c0_7] : memref<128x128xbf16, #tpu.memory_space<vmem>>, vector<128x128xbf16>
    tpu.vector_store %arg6[%c0_6, %c0_7], %8 {strides = array<i32>} : memref<128x128xbf16, #tpu.memory_space<vmem>>, vector<128x128xbf16>,
    return
  }
  func.func @transform_0(%arg0: i32, %arg1: i32, %arg2: i32) -> (i32, i32) {
    %c0_i32 = arith.constant 0 : i32
    return %arg1, %arg2 : i32, i32
  }
  func.func @transform_1(%arg0: i32, %arg1: i32, %arg2: i32) -> (i32, i32) {
    %c0_i32 = arith.constant 0 : i32
    return %arg2, %arg0 : i32, i32
  }
  func.func @transform_2(%arg0: i32, %arg1: i32, %arg2: i32) -> (i32, i32) {
    %c0_i32 = arith.constant 0 : i32
    %c0_i32_0 = arith.constant 0 : i32
    return %c0_i32, %arg0 : i32, i32
  }
  func.func @transform_3(%arg0: i32, %arg1: i32, %arg2: i32) -> (i32, i32) {
    %c0_i32 = arith.constant 0 : i32
    return %arg1, %arg0 : i32, i32
  }
}

module attributes {stable_mosaic.version = 11 : i64} {
  func.func @kernel(%arg0: i32, %arg1: i32, %arg2: i32, %arg3: memref<128x128xbf16, #tpu.memory_space<vmem>>, %arg4: memref<128x128xbf16, #tpu.memory_space<vmem>>, %arg5: memref<1x128xf32, #tpu.memory_space<vmem>>, %arg6: memref<128x128xbf16, #tpu.memory_space<vmem>>) attributes {dimension_semantics = [#tpu.dimension_semantics<parallel>, #tpu.dimension_semantics<parallel>, #tpu.dimension_semantics<arbitrary>], iteration_bounds = array<i64: 1, 1, 1>, scalar_prefetch = 0 : i64, scratch_operands = 0 : i64, tpu.core_type = #tpu.core_type<tc>, window_params = [{transform_indices = @transform_0, window_bounds = array<i64: 128, 128>}, {transform_indices = @transform_1, window_bounds = array<i64: 128, 128>}, {transform_indices = @transform_2, window_bounds = array<i64: 1, 128>}, {transform_indices = @transform_3, window_bounds = array<i64: 128, 128>}]} {
    %c0 = arith.constant 0 : index
    %c0_0 = arith.constant 0 : index
    %0 = vector.load %arg3[%c0, %c0_0] : memref<128x128xbf16, #tpu.memory_space<vmem>>, vector<128x128xbf16>
    %c0_1 = arith.constant 0 : index
    %c0_2 = arith.constant 0 : index
    %1 = vector.load %arg4[%c0_1, %c0_2] : memref<128x128xbf16, #tpu.memory_space<vmem>>, vector<128x128xbf16>
    %cst = arith.constant dense<0.000000e+00> : vector<128x128xf32>
    %2 = tpu.matmul %0, %1, %cst {dimension_numbers = #tpu.dot_dimension_numbers<[1], [0], [0], [1], [0, 0, 1, 1], [], []>} : vector<128x128xbf16>, vector<128x128xbf16>, vector<128x128xf32> -> vector<128x128xf32>
    %c0_3 = arith.constant 0 : index
    %c0_4 = arith.constant 0 : index
    %3 = vector.load %arg5[%c0_3, %c0_4] : memref<1x128xf32, #tpu.memory_space<vmem>>, vector<1x128xf32>
    %4 = vector.broadcast %3 : vector<1x128xf32> to vector<128x128xf32>
    %5 = arith.addf %2, %4 : vector<128x128xf32>
    %6 = arith.truncf %5 : vector<128x128xf32> to vector<128x128xbf16>
    %c0_5 = arith.constant 0 : index
    %c0_6 = arith.constant 0 : index
    %7 = vector.load %arg6[%c0_5, %c0_6] : memref<128x128xbf16, #tpu.memory_space<vmem>>, vector<128x128xbf16>
    tpu.vector_store %arg6[%c0_5, %c0_6], %6 {strides = array<i32>} : memref<128x128xbf16, #tpu.memory_space<vmem>>, vector<128x128xbf16>,
    return
  }
  func.func @transform_0(%arg0: i32, %arg1: i32, %arg2: i32) -> (i32, i32) {
    %c0_i32 = arith.constant 0 : i32
    return %arg1, %arg2 : i32, i32
  }
  func.func @transform_1(%arg0: i32, %arg1: i32, %arg2: i32) -> (i32, i32) {
    %c0_i32 = arith.constant 0 : i32
    return %arg2, %arg0 : i32, i32
  }
  func.func @transform_2(%arg0: i32, %arg1: i32, %arg2: i32) -> (i32, i32) {
    %c0_i32 = arith.constant 0 : i32
    %c0_i32_0 = arith.constant 0 : i32
    return %c0_i32, %arg0 : i32, i32
  }
  func.func @transform_3(%arg0: i32, %arg1: i32, %arg2: i32) -> (i32, i32) {
    %c0_i32 = arith.constant 0 : i32
    return %arg1, %arg0 : i32, i32
  }
}

module attributes {stable_mosaic.version = 11 : i64} {
  func.func @kernel(%arg0: i32, %arg1: i32, %arg2: i32, %arg3: memref<128x128xbf16, #tpu.memory_space<vmem>>, %arg4: memref<128x128xbf16, #tpu.memory_space<vmem>>, %arg5: memref<1x128xf32, #tpu.memory_space<vmem>>, %arg6: memref<128x128xbf16, #tpu.memory_space<vmem>>, %arg7: memref<128x128xf32, #tpu.memory_space<vmem>>) attributes {dimension_semantics = [#tpu.dimension_semantics<parallel>, #tpu.dimension_semantics<parallel>, #tpu.dimension_semantics<arbitrary>], iteration_bounds = array<i64: 1, 1, 1>, scalar_prefetch = 0 : i64, scratch_operands = 0 : i64, tpu.core_type = #tpu.core_type<tc>, window_params = [{transform_indices = @transform_0, window_bounds = array<i64: 128, 128>}, {transform_indices = @transform_1, window_bounds = array<i64: 128, 128>}, {transform_indices = @transform_2, window_bounds = array<i64: 1, 128>}, {transform_indices = @transform_3, window_bounds = array<i64: 128, 128>}, {transform_indices = @transform_4, window_bounds = array<i64: 128, 128>}]} {
    %c0 = arith.constant 0 : index
    %c0_0 = arith.constant 0 : index
    %0 = vector.load %arg3[%c0, %c0_0] : memref<128x128xbf16, #tpu.memory_space<vmem>>, vector<128x128xbf16>
    %c0_1 = arith.constant 0 : index
    %c0_2 = arith.constant 0 : index
    %1 = vector.load %arg4[%c0_1, %c0_2] : memref<128x128xbf16, #tpu.memory_space<vmem>>, vector<128x128xbf16>
    %cst = arith.constant dense<0.000000e+00> : vector<128x128xf32>
    %2 = tpu.matmul %0, %1, %cst {dimension_numbers = #tpu.dot_dimension_numbers<[1], [0], [0], [1], [0, 0, 1, 1], [], []>} : vector<128x128xbf16>, vector<128x128xbf16>, vector<128x128xf32> -> vector<128x128xf32>
    %c0_3 = arith.constant 0 : index
    %c0_4 = arith.constant 0 : index
    %3 = vector.load %arg5[%c0_3, %c0_4] : memref<1x128xf32, #tpu.memory_space<vmem>>, vector<1x128xf32>
    %4 = vector.broadcast %3 : vector<1x128xf32> to vector<128x128xf32>
    %5 = arith.addf %2, %4 : vector<128x128xf32>
    %c0_5 = arith.constant 0 : index
    %c0_6 = arith.constant 0 : index
    %6 = vector.load %arg6[%c0_5, %c0_6] : memref<128x128xbf16, #tpu.memory_space<vmem>>, vector<128x128xbf16>
    %7 = arith.extf %6 : vector<128x128xbf16> to vector<128x128xf32>
    %8 = arith.addf %5, %7 : vector<128x128xf32>
    %cst_7 = arith.constant 0.000000e+00 : f32
    %9 = vector.broadcast %cst_7 : f32 to vector<128x128xf32>
    %10 = arith.maximumf %8, %9 : vector<128x128xf32>
    %c0_8 = arith.constant 0 : index
    %c0_9 = arith.constant 0 : index
    %11 = vector.load %arg7[%c0_8, %c0_9] : memref<128x128xf32, #tpu.memory_space<vmem>>, vector<128x128xf32>
    tpu.vector_store %arg7[%c0_8, %c0_9], %10 {strides = array<i32>} : memref<128x128xf32, #tpu.memory_space<vmem>>, vector<128x128xf32>,
    return
  }
  func.func @transform_0(%arg0: i32, %arg1: i32, %arg2: i32) -> (i32, i32) {
    %c0_i32 = arith.constant 0 : i32
    return %arg1, %arg2 : i32, i32
  }
  func.func @transform_1(%arg0: i32, %arg1: i32, %arg2: i32) -> (i32, i32) {
    %c0_i32 = arith.constant 0 : i32
    return %arg2, %arg0 : i32, i32
  }
  func.func @transform_2(%arg0: i32, %arg1: i32, %arg2: i32) -> (i32, i32) {
    %c0_i32 = arith.constant 0 : i32
    %c0_i32_0 = arith.constant 0 : i32
    return %c0_i32, %arg0 : i32, i32
  }
  func.func @transform_3(%arg0: i32, %arg1: i32, %arg2: i32) -> (i32, i32) {
    %c0_i32 = arith.constant 0 : i32
    return %arg1, %arg0 : i32, i32
  }
  func.func @transform_4(%arg0: i32, %arg1: i32, %arg2: i32) -> (i32, i32) {
    %c0_i32 = arith.constant 0 : i32
    return %arg1, %arg0 : i32, i32
  }
}

</mosaic_0001>

<bundles_post_ra>
// kernel: _lambda_.3
= control target key start
LH: loop header
LB: loop body
LE: loop exit
PB: predicated region body
PF: predicated region fallthrough
CT: control target
= control target key end

     0   :  { %s494_s1 = inlined_call_operand.vmem [shape: bf16[128,128], index: 1, kind: input, shape index: {}]   ;;  %s495_s2 = inlined_call_operand.vmem [shape: f32[1,128], index: 2, kind: input, shape index: {}]   ;;  %s496_s0 = inlined_call_operand.vmem [shape: bf16[128,128], index: 0, kind: input, shape index: {}]   ;;  %s497_s3 = inlined_call_operand.vmem [shape: bf16[128,128], index: 3, kind: output, shape index: {}]  }
   0x1   :  { %v326_v0 = vld [vmem:[%s494_s1 + $0x38] sm:$0xff]  ;;  %v325_v1 = vld [vmem:[%s494_s1 + $0x30] sm:$0xff]  ;;  %v324_v2 = vld [vmem:[%s494_s1 + $0x28] sm:$0xff] }
   0x2   :  { %146 = vmatpush.bf16.msra.mxu0 %v326_v0  ;;  %374 = vmatpush.bf16.msra.mxu1 %v326_v0  ;;  %v323_v3 = vld [vmem:[%s494_s1 + $0x20] sm:$0xff]  ;;  %v322_v4 = vld [vmem:[%s494_s1 + $0x18] sm:$0xff]  ;;  %v321_v5 = vld [vmem:[%s494_s1 + $0x10] sm:$0xff] }
   0x3   :  { %375 = vmatpush.bf16.msra.mxu2 %v326_v0  ;;  %376 = vmatpush.bf16.msra.mxu3 %v326_v0  ;;  %v320_v6 = vld [vmem:[%s494_s1 + $0x8] sm:$0xff]  ;;  %v319_v7 = vld [vmem:[%s494_s1] sm:$0xff]  ;;  %v313_v9 = vld [vmem:[%s496_s0 + $0x10] sm:$0xff] }
   0x4   :  { %v311_v8 = vld [vmem:[%s496_s0] sm:$0xff]  ;;  %v317_v11 = vld [vmem:[%s496_s0 + $0x30] sm:$0xff]  ;;  %v312_v12 = vld [vmem:[%s496_s0 + $0x8] sm:$0xff] }
   0x5   :  { %v315_v10 = vld [vmem:[%s496_s0 + $0x20] sm:$0xff]  ;;  %v314_v13 = vld [vmem:[%s496_s0 + $0x18] sm:$0xff]  ;;  %v316_v14 = vld [vmem:[%s496_s0 + $0x28] sm:$0xff] }
   0x6   :  { %147 = vmatpush.bf16.msra.mxu0 %v325_v1  ;;  %377 = vmatpush.bf16.msra.mxu1 %v325_v1  ;;  %v318_v15 = vld [vmem:[%s496_s0 + $0x38] sm:$0xff]  ;;  %v398_v18 = vld [vmem:[%s495_s2] ss:$0 sm:$0xff] }
   0x7   :  { %378 = vmatpush.bf16.msra.mxu2 %v325_v1  ;;  %379 = vmatpush.bf16.msra.mxu3 %v325_v1 }
   0xa   :  { %148 = vmatpush.bf16.msra.mxu0 %v324_v2  ;;  %380 = vmatpush.bf16.msra.mxu1 %v324_v2 }
   0xb   :  { %381 = vmatpush.bf16.msra.mxu2 %v324_v2  ;;  %382 = vmatpush.bf16.msra.mxu3 %v324_v2 }
   0xe   :  { %149 = vmatpush.bf16.msra.mxu0 %v323_v3  ;;  %383 = vmatpush.bf16.msra.mxu1 %v323_v3 }
   0xf   :  { %384 = vmatpush.bf16.msra.mxu2 %v323_v3  ;;  %385 = vmatpush.bf16.msra.mxu3 %v323_v3 }
  0x12   :  { %150 = vmatpush.bf16.msra.mxu0 %v322_v4  ;;  %386 = vmatpush.bf16.msra.mxu1 %v322_v4 }
  0x13   :  { %387 = vmatpush.bf16.msra.mxu2 %v322_v4  ;;  %388 = vmatpush.bf16.msra.mxu3 %v322_v4 }
  0x16   :  { %151 = vmatpush.bf16.msra.mxu0 %v321_v5  ;;  %389 = vmatpush.bf16.msra.mxu1 %v321_v5 }
  0x17   :  { %390 = vmatpush.bf16.msra.mxu2 %v321_v5  ;;  %391 = vmatpush.bf16.msra.mxu3 %v321_v5 }
  0x1a   :  { %152 = vmatpush.bf16.msra.mxu0 %v320_v6  ;;  %392 = vmatpush.bf16.msra.mxu1 %v320_v6 }
  0x1b   :  { %393 = vmatpush.bf16.msra.mxu2 %v320_v6  ;;  %394 = vmatpush.bf16.msra.mxu3 %v320_v6 }
  0x1e   :  { %153 = vmatpush.bf16.msra.mxu0 %v319_v7  ;;  %395 = vmatpush.bf16.msra.mxu1 %v319_v7 }
  0x1f   :  { %396 = vmatpush.bf16.msra.mxu2 %v319_v7  ;;  %397 = vmatpush.bf16.msra.mxu3 %v319_v7 }
  0x21   :  { %154 = vmatmul.bf16.vlgmr.msra.gmra.mxu0 %v311_v8  ;;  %164 = vmatmul.bf16.vlgmr.msra.gmra.mxu1 %v313_v9 }
  0x22   :  { %174 = vmatmul.bf16.vlgmr.msra.gmra.mxu2 %v315_v10  ;;  %184 = vmatmul.bf16.vlgmr.msra.gmra.mxu3 %v317_v11 }
  0x31   :  { %159 = vmatmul.bf16.gmra.mxu0 %v312_v12  ;;  %169 = vmatmul.bf16.gmra.mxu1 %v314_v13 }
  0x32   :  { %179 = vmatmul.bf16.gmra.mxu2 %v316_v14  ;;  %189 = vmatmul.bf16.gmra.mxu3 %v318_v15 }
  0x9e   :  { %v155_v16 = vpop.f32.mrf.mxu0  ;;  %v165_v17 = vpop.f32.mrf.mxu1 }
  0x9f   :  { %v156_v19 = vadd.f32 %v398_v18, %v155_v16  ;;  %v166_v20 = vadd.f32 %v398_v18, %v165_v17 }
  0xa1   :  { %v195_v27 = vmax.f32 %v156_v19, 0.0  ;;  %v199_v28 = vmax.f32 %v166_v20, 0.0 }
  0xa5   :  { %v175_v21 = vpop.f32.mrf.mxu2  ;;  %v185_v22 = vpop.f32.mrf.mxu3 }
  0xa6   :  { %v157_v23 = vpop.f32.mrf.mxu0  ;;  %v167_v24 = vpop.f32.mrf.mxu1  ;;  %v176_v33 = vadd.f32 %v398_v18, %v175_v21  ;;  %v186_v34 = vadd.f32 %v398_v18, %v185_v22 }
  0xa7   :  { %v158_v25 = vadd.f32 %v398_v18, %v157_v23  ;;  %v168_v26 = vadd.f32 %v398_v18, %v167_v24 }
  0xa8   :  { %v203_v41 = vmax.f32 %v176_v33, 0.0  ;;  %v207_v42 = vmax.f32 %v186_v34, 0.0 }
  0xa9   :  { %v196_v29 = vmax.f32 %v158_v25, 0.0  ;;  %v200_v30 = vmax.f32 %v168_v26, 0.0 }
  0xab   :  { %v330_v31 = vpack.c.bf16 %v196_v29, %v195_v27  ;;  %v340_v32 = vpack.c.bf16 %v200_v30, %v199_v28 }
  0xad   :  { %331 = vst [vmem:[%s497_s3] sm:$0xff] %v330_v31   ;;  %v177_v35 = vpop.f32.mrf.mxu2  ;;  %v187_v36 = vpop.f32.mrf.mxu3 }
  0xae   :  { %368 = vst [vmem:[%s497_s3 + $0x10] sm:$0xff] %v340_v32   ;;  %v178_v37 = vadd.f32 %v398_v18, %v177_v35  ;;  %v188_v38 = vadd.f32 %v398_v18, %v187_v36  ;;  %v160_v39 = vpop.f32.mrf.mxu0  ;;  %v170_v40 = vpop.f32.mrf.mxu1 }
  0xaf   :  { %v161_v47 = vadd.f32 %v398_v18, %v160_v39  ;;  %v171_v48 = vadd.f32 %v398_v18, %v170_v40 }
  0xb0   :  { %v204_v43 = vmax.f32 %v178_v37, 0.0  ;;  %v208_v44 = vmax.f32 %v188_v38, 0.0 }
  0xb1   :  { %v197_v55 = vmax.f32 %v161_v47, 0.0  ;;  %v201_v56 = vmax.f32 %v171_v48, 0.0 }
  0xb2   :  { %v350_v45 = vpack.c.bf16 %v204_v43, %v203_v41  ;;  %v360_v46 = vpack.c.bf16 %v208_v44, %v207_v42 }
  0xb4   :  { %370 = vst [vmem:[%s497_s3 + $0x20] sm:$0xff] %v350_v45  }
  0xb5   :  { %372 = vst [vmem:[%s497_s3 + $0x30] sm:$0xff] %v360_v46   ;;  %v180_v49 = vpop.f32.mrf.mxu2  ;;  %v190_v50 = vpop.f32.mrf.mxu3 }
  0xb6   :  { %v162_v51 = vpop.f32.mrf.mxu0  ;;  %v172_v52 = vpop.f32.mrf.mxu1  ;;  %v181_v61 = vadd.f32 %v398_v18, %v180_v49  ;;  %v191_v62 = vadd.f32 %v398_v18, %v190_v50 }
  0xb7   :  { %v163_v53 = vadd.f32 %v398_v18, %v162_v51  ;;  %v173_v54 = vadd.f32 %v398_v18, %v172_v52 }
  0xb8   :  { %v205_v3 = vmax.f32 %v181_v61, 0.0  ;;  %v209_v4 = vmax.f32 %v191_v62, 0.0 }
  0xb9   :  { %v198_v57 = vmax.f32 %v163_v53, 0.0  ;;  %v202_v58 = vmax.f32 %v173_v54, 0.0 }
  0xbb   :  { %v335_v59 = vpack.c.bf16 %v198_v57, %v197_v55  ;;  %v345_v60 = vpack.c.bf16 %v202_v58, %v201_v56 }
  0xbd   :  { %367 = vst [vmem:[%s497_s3 + $0x8] sm:$0xff] %v335_v59   ;;  %v182_v63 = vpop.f32.mrf.mxu2  ;;  %v192_v0 = vpop.f32.mrf.mxu3 }
  0xbe   :  { %369 = vst [vmem:[%s497_s3 + $0x18] sm:$0xff] %v345_v60   ;;  %v183_v1 = vadd.f32 %v398_v18, %v182_v63  ;;  %v193_v2 = vadd.f32 %v398_v18, %v192_v0 }
  0xc0   :  { %v206_v5 = vmax.f32 %v183_v1, 0.0  ;;  %v210_v6 = vmax.f32 %v193_v2, 0.0 }
  0xc2   :  { %v355_v7 = vpack.c.bf16 %v206_v5, %v205_v3  ;;  %v365_v8 = vpack.c.bf16 %v210_v6, %v209_v4 }
  0xc4   :  { %371 = vst [vmem:[%s497_s3 + $0x28] sm:$0xff] %v355_v7  }
  0xc5   :  { %373 = vst [vmem:[%s497_s3 + $0x38] sm:$0xff] %v365_v8  }

// kernel: _lambda_.4
= control target key start
LH: loop header
LB: loop body
LE: loop exit
PB: predicated region body
PF: predicated region fallthrough
CT: control target
= control target key end

     0   :  { %s478_s1 = inlined_call_operand.vmem [shape: bf16[128,128], index: 1, kind: input, shape index: {}]   ;;  %s479_s2 = inlined_call_operand.vmem [shape: f32[1,128], index: 2, kind: input, shape index: {}]   ;;  %s480_s0 = inlined_call_operand.vmem [shape: bf16[128,128], index: 0, kind: input, shape index: {}]   ;;  %s481_s3 = inlined_call_operand.vmem [shape: bf16[128,128], index: 3, kind: output, shape index: {}]  }
   0x1   :  { %v310_v0 = vld [vmem:[%s478_s1 + $0x38] sm:$0xff]  ;;  %v309_v1 = vld [vmem:[%s478_s1 + $0x30] sm:$0xff]  ;;  %v308_v2 = vld [vmem:[%s478_s1 + $0x28] sm:$0xff] }
   0x2   :  { %146 = vmatpush.bf16.msra.mxu0 %v310_v0  ;;  %358 = vmatpush.bf16.msra.mxu1 %v310_v0  ;;  %v307_v3 = vld [vmem:[%s478_s1 + $0x20] sm:$0xff]  ;;  %v306_v4 = vld [vmem:[%s478_s1 + $0x18] sm:$0xff]  ;;  %v305_v5 = vld [vmem:[%s478_s1 + $0x10] sm:$0xff] }
   0x3   :  { %359 = vmatpush.bf16.msra.mxu2 %v310_v0  ;;  %360 = vmatpush.bf16.msra.mxu3 %v310_v0  ;;  %v304_v6 = vld [vmem:[%s478_s1 + $0x8] sm:$0xff]  ;;  %v303_v7 = vld [vmem:[%s478_s1] sm:$0xff]  ;;  %v297_v9 = vld [vmem:[%s480_s0 + $0x10] sm:$0xff] }
   0x4   :  { %v295_v8 = vld [vmem:[%s480_s0] sm:$0xff]  ;;  %v301_v11 = vld [vmem:[%s480_s0 + $0x30] sm:$0xff]  ;;  %v296_v12 = vld [vmem:[%s480_s0 + $0x8] sm:$0xff] }
   0x5   :  { %v299_v10 = vld [vmem:[%s480_s0 + $0x20] sm:$0xff]  ;;  %v298_v13 = vld [vmem:[%s480_s0 + $0x18] sm:$0xff]  ;;  %v300_v14 = vld [vmem:[%s480_s0 + $0x28] sm:$0xff] }
   0x6   :  { %147 = vmatpush.bf16.msra.mxu0 %v309_v1  ;;  %361 = vmatpush.bf16.msra.mxu1 %v309_v1  ;;  %v302_v15 = vld [vmem:[%s480_s0 + $0x38] sm:$0xff]  ;;  %v382_v18 = vld [vmem:[%s479_s2] ss:$0 sm:$0xff] }
   0x7   :  { %362 = vmatpush.bf16.msra.mxu2 %v309_v1  ;;  %363 = vmatpush.bf16.msra.mxu3 %v309_v1 }
   0xa   :  { %148 = vmatpush.bf16.msra.mxu0 %v308_v2  ;;  %364 = vmatpush.bf16.msra.mxu1 %v308_v2 }
   0xb   :  { %365 = vmatpush.bf16.msra.mxu2 %v308_v2  ;;  %366 = vmatpush.bf16.msra.mxu3 %v308_v2 }
   0xe   :  { %149 = vmatpush.bf16.msra.mxu0 %v307_v3  ;;  %367 = vmatpush.bf16.msra.mxu1 %v307_v3 }
   0xf   :  { %368 = vmatpush.bf16.msra.mxu2 %v307_v3  ;;  %369 = vmatpush.bf16.msra.mxu3 %v307_v3 }
  0x12   :  { %150 = vmatpush.bf16.msra.mxu0 %v306_v4  ;;  %370 = vmatpush.bf16.msra.mxu1 %v306_v4 }
  0x13   :  { %371 = vmatpush.bf16.msra.mxu2 %v306_v4  ;;  %372 = vmatpush.bf16.msra.mxu3 %v306_v4 }
  0x16   :  { %151 = vmatpush.bf16.msra.mxu0 %v305_v5  ;;  %373 = vmatpush.bf16.msra.mxu1 %v305_v5 }
  0x17   :  { %374 = vmatpush.bf16.msra.mxu2 %v305_v5  ;;  %375 = vmatpush.bf16.msra.mxu3 %v305_v5 }
  0x1a   :  { %152 = vmatpush.bf16.msra.mxu0 %v304_v6  ;;  %376 = vmatpush.bf16.msra.mxu1 %v304_v6 }
  0x1b   :  { %377 = vmatpush.bf16.msra.mxu2 %v304_v6  ;;  %378 = vmatpush.bf16.msra.mxu3 %v304_v6 }
  0x1e   :  { %153 = vmatpush.bf16.msra.mxu0 %v303_v7  ;;  %379 = vmatpush.bf16.msra.mxu1 %v303_v7 }
  0x1f   :  { %380 = vmatpush.bf16.msra.mxu2 %v303_v7  ;;  %381 = vmatpush.bf16.msra.mxu3 %v303_v7 }
  0x21   :  { %154 = vmatmul.bf16.vlgmr.msra.gmra.mxu0 %v295_v8  ;;  %164 = vmatmul.bf16.vlgmr.msra.gmra.mxu1 %v297_v9 }
  0x22   :  { %174 = vmatmul.bf16.vlgmr.msra.gmra.mxu2 %v299_v10  ;;  %184 = vmatmul.bf16.vlgmr.msra.gmra.mxu3 %v301_v11 }
  0x31   :  { %159 = vmatmul.bf16.gmra.mxu0 %v296_v12  ;;  %169 = vmatmul.bf16.gmra.mxu1 %v298_v13 }
  0x32   :  { %179 = vmatmul.bf16.gmra.mxu2 %v300_v14  ;;  %189 = vmatmul.bf16.gmra.mxu3 %v302_v15 }
  0x9e   :  { %v155_v16 = vpop.f32.mrf.mxu0  ;;  %v165_v17 = vpop.f32.mrf.mxu1 }
  0x9f   :  { %v156_v23 = vadd.f32 %v382_v18, %v155_v16  ;;  %v166_v24 = vadd.f32 %v382_v18, %v165_v17 }
  0xa5   :  { %v175_v19 = vpop.f32.mrf.mxu2  ;;  %v185_v20 = vpop.f32.mrf.mxu3 }
  0xa6   :  { %v157_v21 = vpop.f32.mrf.mxu0  ;;  %v167_v22 = vpop.f32.mrf.mxu1  ;;  %v176_v31 = vadd.f32 %v382_v18, %v175_v19  ;;  %v186_v32 = vadd.f32 %v382_v18, %v185_v20 }
  0xa7   :  { %v158_v25 = vadd.f32 %v382_v18, %v157_v21  ;;  %v168_v26 = vadd.f32 %v382_v18, %v167_v22 }
  0xa9   :  { %v314_v27 = vpack.c.bf16 %v158_v25, %v156_v23  ;;  %v324_v28 = vpack.c.bf16 %v168_v26, %v166_v24 }
  0xab   :  { %315 = vst [vmem:[%s481_s3] sm:$0xff] %v314_v27  }
  0xac   :  { %352 = vst [vmem:[%s481_s3 + $0x10] sm:$0xff] %v324_v28  }
  0xad   :  { %v177_v29 = vpop.f32.mrf.mxu2  ;;  %v187_v30 = vpop.f32.mrf.mxu3 }
  0xae   :  { %v178_v33 = vadd.f32 %v382_v18, %v177_v29  ;;  %v188_v34 = vadd.f32 %v382_v18, %v187_v30  ;;  %v160_v35 = vpop.f32.mrf.mxu0  ;;  %v170_v36 = vpop.f32.mrf.mxu1 }
  0xaf   :  { %v161_v43 = vadd.f32 %v382_v18, %v160_v35  ;;  %v171_v44 = vadd.f32 %v382_v18, %v170_v36 }
  0xb0   :  { %v334_v37 = vpack.c.bf16 %v178_v33, %v176_v31  ;;  %v344_v38 = vpack.c.bf16 %v188_v34, %v186_v32 }
  0xb2   :  { %354 = vst [vmem:[%s481_s3 + $0x20] sm:$0xff] %v334_v37  }
  0xb3   :  { %356 = vst [vmem:[%s481_s3 + $0x30] sm:$0xff] %v344_v38  }
  0xb5   :  { %v180_v39 = vpop.f32.mrf.mxu2  ;;  %v190_v40 = vpop.f32.mrf.mxu3 }
  0xb6   :  { %v162_v41 = vpop.f32.mrf.mxu0  ;;  %v172_v42 = vpop.f32.mrf.mxu1  ;;  %v181_v51 = vadd.f32 %v382_v18, %v180_v39  ;;  %v191_v52 = vadd.f32 %v382_v18, %v190_v40 }
  0xb7   :  { %v163_v45 = vadd.f32 %v382_v18, %v162_v41  ;;  %v173_v46 = vadd.f32 %v382_v18, %v172_v42 }
  0xb9   :  { %v319_v47 = vpack.c.bf16 %v163_v45, %v161_v43  ;;  %v329_v48 = vpack.c.bf16 %v173_v46, %v171_v44 }
  0xbb   :  { %351 = vst [vmem:[%s481_s3 + $0x8] sm:$0xff] %v319_v47  }
  0xbc   :  { %353 = vst [vmem:[%s481_s3 + $0x18] sm:$0xff] %v329_v48  }
  0xbd   :  { %v182_v49 = vpop.f32.mrf.mxu2  ;;  %v192_v50 = vpop.f32.mrf.mxu3 }
  0xbe   :  { %v183_v53 = vadd.f32 %v382_v18, %v182_v49  ;;  %v193_v54 = vadd.f32 %v382_v18, %v192_v50 }
  0xc0   :  { %v339_v55 = vpack.c.bf16 %v183_v53, %v181_v51  ;;  %v349_v56 = vpack.c.bf16 %v193_v54, %v191_v52 }
  0xc2   :  { %355 = vst [vmem:[%s481_s3 + $0x28] sm:$0xff] %v339_v55  }
  0xc3   :  { %357 = vst [vmem:[%s481_s3 + $0x38] sm:$0xff] %v349_v56  }

// kernel: _lambda_.5
= control target key start
LH: loop header
LB: loop body
LE: loop exit
PB: predicated region body
PF: predicated region fallthrough
CT: control target
= control target key end

     0   :  { %s592_s1 = inlined_call_operand.vmem [shape: bf16[128,128], index: 1, kind: input, shape index: {}]   ;;  %s593_s2 = inlined_call_operand.vmem [shape: f32[1,128], index: 2, kind: input, shape index: {}]   ;;  %s594_s0 = inlined_call_operand.vmem [shape: bf16[128,128], index: 0, kind: input, shape index: {}]   ;;  %s595_s3 = inlined_call_operand.vmem [shape: bf16[128,128], index: 3, kind: input, shape index: {}]   ;;  %s596_s4 = inlined_call_operand.vmem [shape: f32[128,128], index: 4, kind: output, shape index: {}]  }
   0x1   :  { %v361_v0 = vld [vmem:[%s592_s1 + $0x38] sm:$0xff]  ;;  %v360_v1 = vld [vmem:[%s592_s1 + $0x30] sm:$0xff]  ;;  %v359_v2 = vld [vmem:[%s592_s1 + $0x28] sm:$0xff] }
   0x2   :  { %149 = vmatpush.bf16.msra.mxu0 %v361_v0  ;;  %401 = vmatpush.bf16.msra.mxu1 %v361_v0  ;;  %v358_v3 = vld [vmem:[%s592_s1 + $0x20] sm:$0xff]  ;;  %v357_v4 = vld [vmem:[%s592_s1 + $0x18] sm:$0xff]  ;;  %v356_v5 = vld [vmem:[%s592_s1 + $0x10] sm:$0xff] }
   0x3   :  { %402 = vmatpush.bf16.msra.mxu2 %v361_v0  ;;  %403 = vmatpush.bf16.msra.mxu3 %v361_v0  ;;  %v355_v6 = vld [vmem:[%s592_s1 + $0x8] sm:$0xff]  ;;  %v354_v7 = vld [vmem:[%s592_s1] sm:$0xff]  ;;  %v348_v9 = vld [vmem:[%s594_s0 + $0x10] sm:$0xff] }
   0x4   :  { %v346_v8 = vld [vmem:[%s594_s0] sm:$0xff]  ;;  %v352_v11 = vld [vmem:[%s594_s0 + $0x30] sm:$0xff]  ;;  %v347_v12 = vld [vmem:[%s594_s0 + $0x8] sm:$0xff] }
   0x5   :  { %v350_v10 = vld [vmem:[%s594_s0 + $0x20] sm:$0xff]  ;;  %v349_v13 = vld [vmem:[%s594_s0 + $0x18] sm:$0xff]  ;;  %v351_v14 = vld [vmem:[%s594_s0 + $0x28] sm:$0xff] }
   0x6   :  { %150 = vmatpush.bf16.msra.mxu0 %v360_v1  ;;  %404 = vmatpush.bf16.msra.mxu1 %v360_v1  ;;  %v353_v15 = vld [vmem:[%s594_s0 + $0x38] sm:$0xff]  ;;  %v363_v16 = vld [vmem:[%s595_s3] sm:$0xff]   ;;  %v395_v17 = vld [vmem:[%s595_s3 + $0x10] sm:$0xff]  }
   0x7   :  { %405 = vmatpush.bf16.msra.mxu2 %v360_v1  ;;  %406 = vmatpush.bf16.msra.mxu3 %v360_v1  ;;  %v508_v18 = vld [vmem:[%s593_s2] ss:$0 sm:$0xff]  ;;  %v364_v19 = vunpack.c.l.bf16 %v363_v16  ;;  %v372_v20 = vunpack.c.l.bf16 %v395_v17  ;;  %v399_v28 = vld [vmem:[%s595_s3 + $0x30] sm:$0xff]   ;;  %v365_v35 = vunpack.c.h.bf16 %v363_v16  ;;  %v373_v36 = vunpack.c.h.bf16 %v395_v17  ;;  %v394_v49 = vld [vmem:[%s595_s3 + $0x8] sm:$0xff]  }
   0x8   :  { %v397_v27 = vld [vmem:[%s595_s3 + $0x20] sm:$0xff]   ;;  %v388_v32 = vunpack.c.l.bf16 %v399_v28  ;;  %v396_v50 = vld [vmem:[%s595_s3 + $0x18] sm:$0xff]   ;;  %v389_v54 = vunpack.c.h.bf16 %v399_v28  ;;  %v368_v57 = vunpack.c.l.bf16 %v394_v49 }
   0x9   :  { %v380_v31 = vunpack.c.l.bf16 %v397_v27  ;;  %v381_v53 = vunpack.c.h.bf16 %v397_v27  ;;  %v376_v58 = vunpack.c.l.bf16 %v396_v50  ;;  %v377_v16 = vunpack.c.h.bf16 %v396_v50 }
   0xa   :  { %151 = vmatpush.bf16.msra.mxu0 %v359_v2  ;;  %407 = vmatpush.bf16.msra.mxu1 %v359_v2 }
   0xb   :  { %408 = vmatpush.bf16.msra.mxu2 %v359_v2  ;;  %409 = vmatpush.bf16.msra.mxu3 %v359_v2 }
   0xe   :  { %152 = vmatpush.bf16.msra.mxu0 %v358_v3  ;;  %410 = vmatpush.bf16.msra.mxu1 %v358_v3 }
   0xf   :  { %411 = vmatpush.bf16.msra.mxu2 %v358_v3  ;;  %412 = vmatpush.bf16.msra.mxu3 %v358_v3 }
  0x12   :  { %153 = vmatpush.bf16.msra.mxu0 %v357_v4  ;;  %413 = vmatpush.bf16.msra.mxu1 %v357_v4 }
  0x13   :  { %414 = vmatpush.bf16.msra.mxu2 %v357_v4  ;;  %415 = vmatpush.bf16.msra.mxu3 %v357_v4 }
  0x16   :  { %154 = vmatpush.bf16.msra.mxu0 %v356_v5  ;;  %416 = vmatpush.bf16.msra.mxu1 %v356_v5 }
  0x17   :  { %417 = vmatpush.bf16.msra.mxu2 %v356_v5  ;;  %418 = vmatpush.bf16.msra.mxu3 %v356_v5  ;;  %v398_v5 = vld [vmem:[%s595_s3 + $0x28] sm:$0xff]  }
  0x1a   :  { %155 = vmatpush.bf16.msra.mxu0 %v355_v6  ;;  %419 = vmatpush.bf16.msra.mxu1 %v355_v6 }
  0x1b   :  { %420 = vmatpush.bf16.msra.mxu2 %v355_v6  ;;  %421 = vmatpush.bf16.msra.mxu3 %v355_v6  ;;  %v400_v6 = vld [vmem:[%s595_s3 + $0x38] sm:$0xff]  }
  0x1e   :  { %156 = vmatpush.bf16.msra.mxu0 %v354_v7  ;;  %422 = vmatpush.bf16.msra.mxu1 %v354_v7 }
  0x1f   :  { %423 = vmatpush.bf16.msra.mxu2 %v354_v7  ;;  %424 = vmatpush.bf16.msra.mxu3 %v354_v7 }
  0x21   :  { %157 = vmatmul.bf16.vlgmr.msra.gmra.mxu0 %v346_v8  ;;  %167 = vmatmul.bf16.vlgmr.msra.gmra.mxu1 %v348_v9 }
  0x22   :  { %177 = vmatmul.bf16.vlgmr.msra.gmra.mxu2 %v350_v10  ;;  %187 = vmatmul.bf16.vlgmr.msra.gmra.mxu3 %v352_v11  ;;  %v384_v11 = vunpack.c.l.bf16 %v398_v5 }
  0x31   :  { %162 = vmatmul.bf16.gmra.mxu0 %v347_v12  ;;  %172 = vmatmul.bf16.gmra.mxu1 %v349_v13  ;;  %v392_v12 = vunpack.c.l.bf16 %v400_v6 }
  0x32   :  { %182 = vmatmul.bf16.gmra.mxu2 %v351_v14  ;;  %192 = vmatmul.bf16.gmra.mxu3 %v353_v15  ;;  %v369_v15 = vunpack.c.h.bf16 %v394_v49 }
  0x9e   :  { %v158_v21 = vpop.f32.mrf.mxu0  ;;  %v168_v22 = vpop.f32.mrf.mxu1 }
  0x9f   :  { %v159_v23 = vadd.f32 %v508_v18, %v158_v21  ;;  %v169_v24 = vadd.f32 %v508_v18, %v168_v22 }
  0xa1   :  { %v230_v25 = vadd.f32 %v364_v19, %v159_v23  ;;  %v234_v26 = vadd.f32 %v372_v20, %v169_v24 }
  0xa3   :  { %v246_v29 = vmax.f32 %v230_v25, 0.0  ;;  %v250_v30 = vmax.f32 %v234_v26, 0.0 }
  0xa5   :  { %262 = vst [vmem:[%s596_s4] sm:$0xff] %v246_v29  ;;  %v178_v33 = vpop.f32.mrf.mxu2  ;;  %v188_v34 = vpop.f32.mrf.mxu3 }
  0xa6   :  { %266 = vst [vmem:[%s596_s4 + $0x20] sm:$0xff] %v250_v30  ;;  %v179_v37 = vadd.f32 %v508_v18, %v178_v33  ;;  %v189_v38 = vadd.f32 %v508_v18, %v188_v34  ;;  %v160_v39 = vpop.f32.mrf.mxu0  ;;  %v170_v40 = vpop.f32.mrf.mxu1  ;;  %v393_v33 = vunpack.c.h.bf16 %v400_v6 }
  0xa7   :  { %v161_v41 = vadd.f32 %v508_v18, %v160_v39  ;;  %v171_v42 = vadd.f32 %v508_v18, %v170_v40 }
  0xa8   :  { %v238_v43 = vadd.f32 %v380_v31, %v179_v37  ;;  %v242_v44 = vadd.f32 %v388_v32, %v189_v38  ;;  %v385_v32 = vunpack.c.h.bf16 %v398_v5 }
  0xa9   :  { %v231_v45 = vadd.f32 %v365_v35, %v161_v41  ;;  %v235_v46 = vadd.f32 %v373_v36, %v171_v42 }
  0xaa   :  { %v254_v47 = vmax.f32 %v238_v43, 0.0  ;;  %v258_v48 = vmax.f32 %v242_v44, 0.0 }
  0xab   :  { %v247_v51 = vmax.f32 %v231_v45, 0.0  ;;  %v251_v52 = vmax.f32 %v235_v46, 0.0 }
  0xac   :  { %270 = vst [vmem:[%s596_s4 + $0x40] sm:$0xff] %v254_v47 }
  0xad   :  { %274 = vst [vmem:[%s596_s4 + $0x60] sm:$0xff] %v258_v48  ;;  %v180_v55 = vpop.f32.mrf.mxu2  ;;  %v190_v56 = vpop.f32.mrf.mxu3 }
  0xae   :  { %263 = vst [vmem:[%s596_s4 + $0x8] sm:$0xff] %v247_v51  ;;  %v181_v59 = vadd.f32 %v508_v18, %v180_v55  ;;  %v191_v60 = vadd.f32 %v508_v18, %v190_v56  ;;  %v163_v61 = vpop.f32.mrf.mxu0  ;;  %v173_v62 = vpop.f32.mrf.mxu1 }
  0xaf   :  { %267 = vst [vmem:[%s596_s4 + $0x28] sm:$0xff] %v251_v52  ;;  %v164_v63 = vadd.f32 %v508_v18, %v163_v61  ;;  %v174_v0 = vadd.f32 %v508_v18, %v173_v62 }
  0xb0   :  { %v239_v1 = vadd.f32 %v381_v53, %v181_v59  ;;  %v243_v2 = vadd.f32 %v389_v54, %v191_v60 }
  0xb1   :  { %v232_v3 = vadd.f32 %v368_v57, %v164_v63  ;;  %v236_v4 = vadd.f32 %v376_v58, %v174_v0 }
  0xb2   :  { %v255_v7 = vmax.f32 %v239_v1, 0.0  ;;  %v259_v8 = vmax.f32 %v243_v2, 0.0 }
  0xb3   :  { %v248_v9 = vmax.f32 %v232_v3, 0.0  ;;  %v252_v10 = vmax.f32 %v236_v4, 0.0 }
  0xb4   :  { %271 = vst [vmem:[%s596_s4 + $0x48] sm:$0xff] %v255_v7 }
  0xb5   :  { %275 = vst [vmem:[%s596_s4 + $0x68] sm:$0xff] %v259_v8  ;;  %v183_v13 = vpop.f32.mrf.mxu2  ;;  %v193_v14 = vpop.f32.mrf.mxu3 }
  0xb6   :  { %264 = vst [vmem:[%s596_s4 + $0x10] sm:$0xff] %v248_v9  ;;  %v184_v17 = vadd.f32 %v508_v18, %v183_v13  ;;  %v194_v19 = vadd.f32 %v508_v18, %v193_v14  ;;  %v165_v20 = vpop.f32.mrf.mxu0  ;;  %v175_v21 = vpop.f32.mrf.mxu1 }
  0xb7   :  { %268 = vst [vmem:[%s596_s4 + $0x30] sm:$0xff] %v252_v10  ;;  %v166_v22 = vadd.f32 %v508_v18, %v165_v20  ;;  %v176_v23 = vadd.f32 %v508_v18, %v175_v21 }
  0xb8   :  { %v240_v24 = vadd.f32 %v384_v11, %v184_v17  ;;  %v244_v25 = vadd.f32 %v392_v12, %v194_v19 }
  0xb9   :  { %v233_v26 = vadd.f32 %v369_v15, %v166_v22  ;;  %v237_v27 = vadd.f32 %v377_v16, %v176_v23 }
  0xba   :  { %v256_v28 = vmax.f32 %v240_v24, 0.0  ;;  %v260_v29 = vmax.f32 %v244_v25, 0.0 }
  0xbb   :  { %v249_v30 = vmax.f32 %v233_v26, 0.0  ;;  %v253_v31 = vmax.f32 %v237_v27, 0.0 }
  0xbc   :  { %272 = vst [vmem:[%s596_s4 + $0x50] sm:$0xff] %v256_v28 }
  0xbd   :  { %276 = vst [vmem:[%s596_s4 + $0x70] sm:$0xff] %v260_v29  ;;  %v185_v34 = vpop.f32.mrf.mxu2  ;;  %v195_v35 = vpop.f32.mrf.mxu3 }
  0xbe   :  { %265 = vst [vmem:[%s596_s4 + $0x18] sm:$0xff] %v249_v30  ;;  %v186_v36 = vadd.f32 %v508_v18, %v185_v34  ;;  %v196_v37 = vadd.f32 %v508_v18, %v195_v35 }
  0xbf   :  { %269 = vst [vmem:[%s596_s4 + $0x38] sm:$0xff] %v253_v31 }
  0xc0   :  { %v241_v38 = vadd.f32 %v385_v32, %v186_v36  ;;  %v245_v39 = vadd.f32 %v393_v33, %v196_v37 }
  0xc2   :  { %v257_v40 = vmax.f32 %v241_v38, 0.0  ;;  %v261_v41 = vmax.f32 %v245_v39, 0.0 }
  0xc4   :  { %273 = vst [vmem:[%s596_s4 + $0x58] sm:$0xff] %v257_v40 }
  0xc5   :  { %277 = vst [vmem:[%s596_s4 + $0x78] sm:$0xff] %v261_v41 }

</bundles_post_ra>
